<compile_context>
chip_gen: v5e
topology: v5e:2x2
jax: 0.10.0
libtpu: 0.0.40
codegen_flags: <defaults>
</compile_context>

<pallas_src>
import jax
import jax.numpy as jnp
from jax import lax
from jax.experimental import pallas as pl
from jax.experimental.pallas import tpu as pltpu


def _round_up(x, m):
    return ((x + m - 1) // m) * m


def _linear_kernel(z_ref, w_ref, b_ref, o_ref):
    # z_ref: [TB, K]  streamed batch tile (ragged tail rows may hold garbage;
    #                 their output rows are OOB and masked on writeback)
    # w_ref: [N, K]   resident weight, PyTorch [out, in] layout (no transpose)
    # b_ref: [1, N]   resident bias row (f32)
    # o_ref: [TB, N]  output tile (lane dim == full array dim N)
    acc = lax.dot_general(
        z_ref[...], w_ref[...],
        dimension_numbers=(((1,), (1,)), ((), ())),   # contract K with K
        preferred_element_type=jnp.float32,
    )
    o_ref[...] = (acc + b_ref[...]).astype(o_ref.dtype)


def mean_module_forward(z, weight, bias, *,
                        block_b=8192,
                        pallas_min_batch=1024,
                        force_pallas=False,
                        compute_dtype=None):
    """y = z @ weight.T + bias  (exact nn.Linear semantics of MeanModule.fc).

    z:      [batch, latent_channels]
    weight: [out_channels, latent_channels]   (PyTorch convention, used as-is)
    bias:   [out_channels]
    returns [batch, out_channels] in z.dtype
    """
    B, K = z.shape
    N, K2 = weight.shape
    assert K == K2, "latent_channels mismatch"
    out_dtype = z.dtype

    # Tiny-problem dispatch: pallas_call launch + per-step overhead exceeds the
    # ~2*B*K*N flops at small batch; let XLA fuse it instead.
    if not force_pallas and B < pallas_min_batch:
        return (z @ weight.T + bias).astype(out_dtype)

    if compute_dtype is not None:  # optional bf16 streaming path (v6e/v7x)
        z = z.astype(compute_dtype)
        weight = weight.astype(compute_dtype)

    bias_row = bias.reshape(1, N).astype(jnp.float32)

    # Batch tile: big enough to amortize ~0.35us/step overhead; multiple of 8
    # sublanes when it tiles, or the full batch when one step suffices.
    if block_b >= B:
        TB = B                      # single step; full-dim block, no (8,) rule needed
    else:
        TB = _round_up(block_b, 8)  # divides nothing necessarily: ragged tail is OK
    grid = (pl.cdiv(B, TB),)

    cost = pl.CostEstimate(
        flops=2 * B * K * N,
        transcendentals=0,
        bytes_accessed=(z.dtype.itemsize * B * K
                        + weight.dtype.itemsize * N * K
                        + 4 * N
                        + jnp.dtype(out_dtype).itemsize * B * N),
    )

    # VMEM per step: double-buffered z tile + out tile + resident W/bias
    # (~3 MiB at TB=8192 f32) << every generation's scoped-VMEM default.
    return pl.pallas_call(
        _linear_kernel,
        out_shape=jax.ShapeDtypeStruct((B, N), out_dtype),
        grid_spec=pltpu.PrefetchScalarGridSpec(
            num_scalar_prefetch=0,
            grid=grid,
            in_specs=[
                pl.BlockSpec((TB, K), lambda i: (i, 0)),   # z: streamed per batch tile
                pl.BlockSpec((N, K), lambda i: (0, 0)),    # weight: resident (one DMA)
                pl.BlockSpec((1, N), lambda i: (0, 0)),    # bias: resident (one DMA)
            ],
            out_specs=pl.BlockSpec((TB, N), lambda i: (i, 0)),
        ),
        compiler_params=pltpu.CompilerParams(
            dimension_semantics=("parallel",),   # independent batch tiles -> 2-TC shard on v7x
        ),
        cost_estimate=cost,
    )(z, weight, bias_row)


if __name__ == "__main__":
    # Shapes consistent with MeanModule(latent_channels=32, out_channels=16).
    latent_channels = 32
    out_channels = 16

    key = jax.random.PRNGKey(0)
    kz, kw, kb, kz2 = jax.random.split(key, 4)

    # Deterministic params mimicking nn.Linear default init: U(-1/sqrt(fan_in), +).
    bound = 1.0 / (latent_channels ** 0.5)
    weight = jax.random.uniform(kw, (out_channels, latent_channels),
                                dtype=jnp.float32, minval=-bound, maxval=bound)
    bias = jax.random.uniform(kb, (out_channels,),
                              dtype=jnp.float32, minval=-bound, maxval=bound)

    # Small shape (single-step grid); force the Pallas path so the kernel runs.
    batch_small = 8
    z_small = jax.random.normal(kz, (batch_small, latent_channels), dtype=jnp.float32)
    y_small = mean_module_forward(z_small, weight, bias, force_pallas=True)
    jax.block_until_ready(y_small)
    ref_small = z_small @ weight.T + bias
    assert y_small.shape == (batch_small, out_channels)
    assert jnp.allclose(y_small, ref_small, atol=1e-5, rtol=1e-5), "small-batch mismatch"

    # Multi-step grid with a ragged last block (2072 = 4*512 + 24): exercises the
    # cdiv grid + masked OOB writeback, no wrapper-side padding of z or y.
    batch_big = 2072
    z_big = jax.random.normal(kz2, (batch_big, latent_channels), dtype=jnp.float32)
    y_big = mean_module_forward(z_big, weight, bias, block_b=512)
    jax.block_until_ready(y_big)
    ref_big = z_big @ weight.T + bias
    assert y_big.shape == (batch_big, out_channels)
    assert jnp.allclose(y_big, ref_big, atol=1e-5, rtol=1e-5), "big-batch mismatch"

    print("KERNEL_OK")
</pallas_src>

<mosaic_0001>
module attributes {stable_mosaic.version = 11 : i64} {
  func.func @_linear_kernel(%arg0: i32, %arg1: memref<8x32xf32, #tpu.memory_space<vmem>>, %arg2: memref<16x32xf32, #tpu.memory_space<vmem>>, %arg3: memref<1x16xf32, #tpu.memory_space<vmem>>, %arg4: memref<8x16xf32, #tpu.memory_space<vmem>>) attributes {dimension_semantics = [#tpu.dimension_semantics<parallel>], iteration_bounds = array<i64: 1>, scalar_prefetch = 0 : i64, scratch_operands = 0 : i64, tpu.core_type = #tpu.core_type<tc>, window_params = [{transform_indices = @transform_0, window_bounds = array<i64: 8, 32>}, {pipeline_mode = #tpu.pipeline_mode<synchronous>, transform_indices = @transform_1, window_bounds = array<i64: 16, 32>}, {pipeline_mode = #tpu.pipeline_mode<synchronous>, transform_indices = @transform_2, window_bounds = array<i64: 1, 16>}, {transform_indices = @transform_3, window_bounds = array<i64: 8, 16>}]} {
    %c0 = arith.constant 0 : index
    %c0_0 = arith.constant 0 : index
    %0 = vector.load %arg1[%c0, %c0_0] : memref<8x32xf32, #tpu.memory_space<vmem>>, vector<8x32xf32>
    %c0_1 = arith.constant 0 : index
    %c0_2 = arith.constant 0 : index
    %1 = vector.load %arg2[%c0_1, %c0_2] : memref<16x32xf32, #tpu.memory_space<vmem>>, vector<16x32xf32>
    %cst = arith.constant dense<0.000000e+00> : vector<8x16xf32>
    %2 = tpu.matmul %0, %1, %cst {dimension_numbers = #tpu.dot_dimension_numbers<[1], [1], [0], [0], [0, 0, 1, 0], [], []>} : vector<8x32xf32>, vector<16x32xf32>, vector<8x16xf32> -> vector<8x16xf32>
    %c0_3 = arith.constant 0 : index
    %c0_4 = arith.constant 0 : index
    %3 = vector.load %arg3[%c0_3, %c0_4] : memref<1x16xf32, #tpu.memory_space<vmem>>, vector<1x16xf32>
    %4 = vector.broadcast %3 : vector<1x16xf32> to vector<8x16xf32>
    %5 = arith.addf %2, %4 : vector<8x16xf32>
    %c0_5 = arith.constant 0 : index
    %c0_6 = arith.constant 0 : index
    %6 = vector.load %arg4[%c0_5, %c0_6] : memref<8x16xf32, #tpu.memory_space<vmem>>, vector<8x16xf32>
    tpu.vector_store %arg4[%c0_5, %c0_6], %5 {strides = array<i32>} : memref<8x16xf32, #tpu.memory_space<vmem>>, vector<8x16xf32>,
    return
  }
  func.func @transform_0(%arg0: i32) -> (i32, i32) {
    %c0_i32 = arith.constant 0 : i32
    %c0_i32_0 = arith.constant 0 : i32
    return %arg0, %c0_i32 : i32, i32
  }
  func.func @transform_1(%arg0: i32) -> (i32, i32) {
    %c0_i32 = arith.constant 0 : i32
    %c0_i32_0 = arith.constant 0 : i32
    %c0_i32_1 = arith.constant 0 : i32
    return %c0_i32, %c0_i32_0 : i32, i32
  }
  func.func @transform_2(%arg0: i32) -> (i32, i32) {
    %c0_i32 = arith.constant 0 : i32
    %c0_i32_0 = arith.constant 0 : i32
    %c0_i32_1 = arith.constant 0 : i32
    return %c0_i32, %c0_i32_0 : i32, i32
  }
  func.func @transform_3(%arg0: i32) -> (i32, i32) {
    %c0_i32 = arith.constant 0 : i32
    %c0_i32_0 = arith.constant 0 : i32
    return %arg0, %c0_i32 : i32, i32
  }
}

</mosaic_0001>

<bundles_post_ra>
// kernel: tpu_custom_call.1
= control target key start
LH: loop header
LB: loop body
LE: loop exit
PB: predicated region body
PF: predicated region fallthrough
CT: control target
= control target key end

     0   :  { %8 = vsyncpa [#allocation3], 0  ;;  %s226_s0 = inlined_call_operand.hbm [shape: f32[8,32], index: 0, kind: input, shape index: {}]   ;;  %s227_s1 = inlined_call_operand.hbm [shape: f32[16,32], index: 1, kind: input, shape index: {}]   ;;  %s228_s2 = inlined_call_operand.vmem [shape: f32[1,16], index: 2, kind: input, shape index: {}]   ;;  %s229_s3 = inlined_call_operand.hbm [shape: f32[8,16], index: 3, kind: output, shape index: {}]  }
   0x1   :  { %9 = vsyncpa [#allocation6], 0 }
   0x2   :  { %10 = vsyncpa [#allocation4], 0  ;;  %s16_s14 = sshll.u32 %s226_s0, 4  ;;  %s189_s15 = smov [#allocation2]   ;;  %s17_s14 = int_to_ptr.hbm [resolvable:$true] %s16_s14 }
   0x3   :  { %s18_s16 = sshll.u32 %s189_s15, 4  ;;  %s26_s19 = sshll.u32 %s227_s1, 4  ;;  %s19_s16 = int_to_ptr.vmem [resolvable:$true] %s18_s16  ;;  %s27_s19 = int_to_ptr.hbm [resolvable:$true] %s26_s19 }
   0x4   :  { %21 = dma.hbm_to_vmem [thread:$0]  %s17_s14, 128, %s19_s16, [#allocation3]  }
   0x5   :  { %s190_s20 = smov [#allocation5]   ;;  %s191_s22 = smov 128  }
   0x6   :  { %s28_s21 = sshll.u32 %s190_s20, 4  ;;  %s192_s23 = smov 8   ;;  %s29_s21 = int_to_ptr.vmem [resolvable:$true] %s28_s21 }
   0x7   :  { %34 = dma.hbm_to_vmem [thread:$0]  %s27_s19, 256, %s29_s21, [#allocation6], %s191_s22, %s191_s22, %s192_s23  }
   0x8   :  { %183 = dma.done.wait [#allocation3], 128  }
   0x9   :  { %184 = vsyncadd [#allocation3], 4294967168 }
   0xa   :  { %185 = dma.done.wait [#allocation6], 256  }
   0xb   :  { %186 = vsyncadd [#allocation6], 4294967040  ;;  %vm52_vm0 = vcmask 261120   ;;  %v47_v0 = vld [vmem:[#allocation5 + $0x8] sm:$0xff]  ;;  %v46_v1 = vld [vmem:[#allocation5] sm:$0xff]  ;;  %s193_s24 = smov [#allocation7]  }
   0xc   :  { %102 = vmatpush.xpose.msk.msra.mxu0 %vm52_vm0, %v47_v0  ;;  %v45_v2 = vld [vmem:[#allocation2] sm:$0xff]  ;;  %s89_s25 = sshll.u32 %s193_s24, 4  ;;  %s91_s28 = sshll.u32 %s229_s3, 4  ;;  %vm82_vm1 = vcmask 130048   ;;  %s90_s25 = int_to_ptr.vmem [resolvable:$true] %s89_s25  ;;  %s92_s28 = int_to_ptr.hbm [resolvable:$true] %s91_s28 }
   0xd   :  { %v110_v3 = vld [vmem:[%s228_s2] ss:$0 sm:$0xff] }
  0x10   :  { %103 = vmatpush.xpose.msk.msra.mxu0 %vm52_vm0, %v46_v1 }
  0x13   :  { %104 = vmatmul.msk.f32.vlgmr.msra.gmra.mxu0 %vm52_vm0, %v45_v2 }
  0x90   :  { %v79_v4 = vpop.f32.mrf.mxu0 }
  0x91   :  { %v80_v5 = vadd.f32 %v110_v3, %v79_v4 }
  0x93   :  { %83 = vst.msk [vmem:[#allocation7] sm:$0xff] %vm82_vm1, %v80_v5 }
  0x94   :  { %94 = dma.vmem_to_hbm [thread:$0]  %s90_s25, 128, %s92_s28, [#allocation4]  }
  0x95   :  { %187 = dma.done.wait [#allocation4], 128  }
  0x96   :  { %188 = vsyncadd [#allocation4], 4294967168 }
  0x97   :  { %99 = vsyncpa [#allocation3], 1 }
  0x98   :  { %100 = vsyncpa [#allocation6], 1 }
  0x99   :  { %101 = vsyncpa [#allocation4], 1 }

</bundles_post_ra>
